<compile_context>
chip_gen: v5e
topology: v5e:2x2
jax: 0.10.0
libtpu: 0.0.40
codegen_flags: <defaults>
</compile_context>

<pallas_src>
import jax
import jax.numpy as jnp
from jax.experimental import pallas as pl
from jax.experimental.pallas import tpu as pltpu


def _matmul_kernel_single_k(a_ref, b_ref, o_ref):
    # K fits in a single tile: no accumulator, no init/finalize phases.
    o_ref[...] = jnp.dot(
        a_ref[...], b_ref[...], preferred_element_type=jnp.float32
    ).astype(o_ref.dtype)


def _matmul_kernel_multi_k(a_ref, b_ref, o_ref, acc_ref):
    # General accumulate-over-K path (last grid axis, marked "arbitrary").
    @pl.when(pl.program_id(2) == 0)
    def _():
        acc_ref[...] = jnp.zeros_like(acc_ref)

    acc_ref[...] += jnp.dot(
        a_ref[...], b_ref[...], preferred_element_type=jnp.float32
    )

    @pl.when(pl.program_id(2) == pl.num_programs(2) - 1)
    def _():
        o_ref[...] = acc_ref[...].astype(o_ref.dtype)


def mf_forward(cfs, cmps, *, tm=None, tn=None, tk=None,
               vmem_budget_bytes=48 * 1024 * 1024):
    """Pallas equivalent of MF.forward(): cfs @ cmps."""
    M, K = cfs.shape
    K2, N = cmps.shape
    assert K == K2, "inner dimensions must match"

    itemsize = jnp.dtype(cfs.dtype).itemsize

    # Default tile policy: whole dims for small problems (single grid step),
    # capped for large problems so tiles stay well inside VMEM on all
    # generations (v7x has only 64 MiB per TensorCore).
    if tm is None:
        tm = M if M <= 1024 else 1024
    if tk is None:
        tk = K if K <= 2048 else 512
    if tn is None:
        tn = N if N <= 2048 else 512

    def _vmem_bytes(bm, bk, bn):
        # double-buffered inputs + double-buffered output + f32 accumulator
        return (2 * (bm * bk + bk * bn) * itemsize
                + 2 * bm * bn * itemsize
                + bm * bn * 4)

    while _vmem_bytes(tm, tk, tn) > vmem_budget_bytes and tk > 512:
        tk //= 2
    while _vmem_bytes(tm, tk, tn) > vmem_budget_bytes and tn > 512:
        tn //= 2
    while _vmem_bytes(tm, tk, tn) > vmem_budget_bytes and tm > 512:
        tm //= 2

    assert M % tm == 0 and K % tk == 0 and N % tn == 0, (
        "tile sizes must evenly divide the problem dims"
    )

    grid = (M // tm, N // tn, K // tk)
    single_k = grid[2] == 1

    if single_k:
        kernel = _matmul_kernel_single_k
        scratch_shapes = ()
    else:
        kernel = _matmul_kernel_multi_k
        scratch_shapes = [pltpu.VMEM((tm, tn), jnp.float32)]

    cost = pl.CostEstimate(
        flops=2 * M * N * K,
        transcendentals=0,
        bytes_accessed=(M * K + K * N + M * N) * itemsize,
    )

    return pl.pallas_call(
        kernel,
        out_shape=jax.ShapeDtypeStruct((M, N), cfs.dtype),
        grid=grid,
        in_specs=[
            pl.BlockSpec((tm, tk), lambda i, j, k: (i, k)),
            pl.BlockSpec((tk, tn), lambda i, j, k: (k, j)),
        ],
        out_specs=pl.BlockSpec((tm, tn), lambda i, j, k: (i, j)),
        scratch_shapes=scratch_shapes,
        compiler_params=pltpu.CompilerParams(
            dimension_semantics=("parallel", "parallel", "arbitrary")
        ),
        cost_estimate=cost,
    )(cfs, cmps)


if __name__ == "__main__":
    # Module hyperparameters (small, consistent with MF.__init__).
    n_coeffs, n_comps, n_pix = 8, 32, 16

    key = jax.random.PRNGKey(0)
    k_cfs, k_cmps = jax.random.split(key)
    # torch.rand -> U[0, 1)
    cfs = jax.random.uniform(k_cfs, (n_coeffs, n_comps), dtype=jnp.float32)
    cmps = jax.random.uniform(
        k_cmps, (n_comps, n_pix * n_pix), dtype=jnp.float32
    )

    out = mf_forward(cfs, cmps)
    out = jax.block_until_ready(out)

    # Correctness check against plain JAX reference.
    ref = cfs @ cmps
    assert out.shape == (n_coeffs, n_pix * n_pix)
    assert jnp.allclose(out, ref, atol=1e-5, rtol=1e-5)

    print("KERNEL_OK")
</pallas_src>

<mosaic_0001>
module attributes {stable_mosaic.version = 11 : i64} {
  func.func @_matmul_kernel_single_k(%arg0: i32, %arg1: i32, %arg2: i32, %arg3: memref<8x32xf32, #tpu.memory_space<vmem>>, %arg4: memref<32x256xf32, #tpu.memory_space<vmem>>, %arg5: memref<8x256xf32, #tpu.memory_space<vmem>>) attributes {dimension_semantics = [#tpu.dimension_semantics<parallel>, #tpu.dimension_semantics<parallel>, #tpu.dimension_semantics<arbitrary>], iteration_bounds = array<i64: 1, 1, 1>, scalar_prefetch = 0 : i64, scratch_operands = 0 : i64, tpu.core_type = #tpu.core_type<tc>, window_params = [{transform_indices = @transform_0, window_bounds = array<i64: 8, 32>}, {transform_indices = @transform_1, window_bounds = array<i64: 32, 256>}, {transform_indices = @transform_2, window_bounds = array<i64: 8, 256>}]} {
    %c0 = arith.constant 0 : index
    %c0_0 = arith.constant 0 : index
    %0 = vector.load %arg3[%c0, %c0_0] : memref<8x32xf32, #tpu.memory_space<vmem>>, vector<8x32xf32>
    %c0_1 = arith.constant 0 : index
    %c0_2 = arith.constant 0 : index
    %1 = vector.load %arg4[%c0_1, %c0_2] : memref<32x256xf32, #tpu.memory_space<vmem>>, vector<32x256xf32>
    %cst = arith.constant dense<0.000000e+00> : vector<8x256xf32>
    %2 = tpu.matmul %0, %1, %cst {dimension_numbers = #tpu.dot_dimension_numbers<[1], [0], [0], [1], [0, 0, 1, 1], [], []>} : vector<8x32xf32>, vector<32x256xf32>, vector<8x256xf32> -> vector<8x256xf32>
    %c0_3 = arith.constant 0 : index
    %c0_4 = arith.constant 0 : index
    %3 = vector.load %arg5[%c0_3, %c0_4] : memref<8x256xf32, #tpu.memory_space<vmem>>, vector<8x256xf32>
    tpu.vector_store %arg5[%c0_3, %c0_4], %2 {strides = array<i32>} : memref<8x256xf32, #tpu.memory_space<vmem>>, vector<8x256xf32>,
    return
  }
  func.func @transform_0(%arg0: i32, %arg1: i32, %arg2: i32) -> (i32, i32) {
    %c0_i32 = arith.constant 0 : i32
    return %arg0, %arg2 : i32, i32
  }
  func.func @transform_1(%arg0: i32, %arg1: i32, %arg2: i32) -> (i32, i32) {
    %c0_i32 = arith.constant 0 : i32
    return %arg2, %arg1 : i32, i32
  }
  func.func @transform_2(%arg0: i32, %arg1: i32, %arg2: i32) -> (i32, i32) {
    %c0_i32 = arith.constant 0 : i32
    return %arg0, %arg1 : i32, i32
  }
}

</mosaic_0001>

<bundles_post_ra>
// kernel: tpu_custom_call.1
= control target key start
LH: loop header
LB: loop body
LE: loop exit
PB: predicated region body
PF: predicated region fallthrough
CT: control target
= control target key end

     0   :  { %7 = vsyncpa [#allocation3], 0  ;;  %s229_s0 = inlined_call_operand.hbm [shape: f32[8,32], index: 0, kind: input, shape index: {}]   ;;  %s230_s1 = inlined_call_operand.hbm [shape: f32[32,256], index: 1, kind: input, shape index: {}]   ;;  %s231_s2 = inlined_call_operand.hbm [shape: f32[8,256], index: 2, kind: output, shape index: {}]  }
   0x1   :  { %8 = vsyncpa [#allocation6], 0 }
   0x2   :  { %9 = vsyncpa [#allocation4], 0  ;;  %s15_s11 = sshll.u32 %s229_s0, 4  ;;  %s200_s12 = smov [#allocation2]   ;;  %s16_s11 = int_to_ptr.hbm [resolvable:$true] %s15_s11 }
   0x3   :  { %s17_s13 = sshll.u32 %s200_s12, 4  ;;  %s25_s16 = sshll.u32 %s230_s1, 4  ;;  %s18_s13 = int_to_ptr.vmem [resolvable:$true] %s17_s13  ;;  %s26_s16 = int_to_ptr.hbm [resolvable:$true] %s25_s16 }
   0x4   :  { %20 = dma.hbm_to_vmem [thread:$0]  %s16_s11, 128, %s18_s13, [#allocation3]  }
   0x5   :  { %s201_s17 = smov [#allocation5]   ;;  %s202_s19 = smov 256  }
   0x6   :  { %s27_s18 = sshll.u32 %s201_s17, 4  ;;  %s203_s20 = smov 16   ;;  %s28_s18 = int_to_ptr.vmem [resolvable:$true] %s27_s18 }
   0x7   :  { %33 = dma.hbm_to_vmem [thread:$0]  %s26_s16, 1024, %s28_s18, [#allocation6], %s202_s19, %s202_s19, %s203_s20  }
   0x8   :  { %194 = dma.done.wait [#allocation3], 128  }
   0x9   :  { %195 = vsyncadd [#allocation3], 4294967168 }
   0xa   :  { %196 = dma.done.wait [#allocation6], 1024  }
   0xb   :  { %197 = vsyncadd [#allocation6], 4294966272  ;;  %v49_v0 = vld [vmem:[#allocation5 + $0x30] sm:$0xff]  ;;  %v50_v1 = vld [vmem:[#allocation5 + $0x38] sm:$0xff]  ;;  %vm51_vm0 = vcmask 261120   ;;  %s204_s0 = smov [#allocation7]  }
   0xc   :  { %v47_v2 = vld [vmem:[#allocation5 + $0x20] sm:$0xff]  ;;  %67 = vmatpush.msra.mxu0 %v49_v0  ;;  %87 = vmatpush.msra.mxu1 %v50_v1  ;;  %v48_v3 = vld [vmem:[#allocation5 + $0x28] sm:$0xff]  ;;  %v45_v4 = vld [vmem:[#allocation5 + $0x10] sm:$0xff]  ;;  %s102_s1 = sshll.u32 %s204_s0, 4  ;;  %s104_s23 = sshll.u32 %s231_s2, 4  ;;  %s103_s1 = int_to_ptr.vmem [resolvable:$true] %s102_s1  ;;  %s105_s23 = int_to_ptr.hbm [resolvable:$true] %s104_s23 }
   0xd   :  { %v46_v5 = vld [vmem:[#allocation5 + $0x18] sm:$0xff]  ;;  %v43_v6 = vld [vmem:[#allocation5] sm:$0xff]  ;;  %v44_v7 = vld [vmem:[#allocation5 + $0x8] sm:$0xff] }
   0xe   :  { %68 = vmatpush.msra.mxu0 %v47_v2  ;;  %88 = vmatpush.msra.mxu1 %v48_v3  ;;  %v42_v8 = vld [vmem:[#allocation2] sm:$0xff] }
  0x10   :  { %69 = vmatpush.msra.mxu0 %v45_v4  ;;  %89 = vmatpush.msra.mxu1 %v46_v5 }
  0x12   :  { %70 = vmatpush.msra.mxu0 %v43_v6  ;;  %90 = vmatpush.msra.mxu1 %v44_v7 }
  0x13   :  { %115 = vmatmul.msk.f32.vlgmr.msra.gmra.mxu0 %vm51_vm0, %v42_v8  ;;  %116 = vmatmul.msk.f32.vlgmr.msra.gmra.mxu1 %vm51_vm0, %v42_v8 }
  0x90   :  { %v72_v9 = vpop.f32.mrf.mxu0  ;;  %v92_v10 = vpop.f32.mrf.mxu1 }
  0x91   :  { %95 = vst [vmem:[#allocation7] sm:$0xff] %v72_v9 }
  0x92   :  { %96 = vst [vmem:[#allocation7 + $0x8] sm:$0xff] %v92_v10 }
  0x93   :  { %107 = dma.vmem_to_hbm [thread:$0]  %s103_s1, 256, %s105_s23, [#allocation4]  }
  0x94   :  { %198 = dma.done.wait [#allocation4], 256  }
  0x95   :  { %199 = vsyncadd [#allocation4], 4294967040 }
  0x96   :  { %112 = vsyncpa [#allocation3], 1 }
  0x97   :  { %113 = vsyncpa [#allocation6], 1 }
  0x98   :  { %114 = vsyncpa [#allocation4], 1 }

</bundles_post_ra>
